<compile_context>
chip_gen: v6e
topology: v6e:2x2x1
jax: 0.10.0
libtpu: 0.0.40
codegen_flags: <defaults>
</compile_context>

<pallas_src>
import functools

import jax
import jax.numpy as jnp
from jax.experimental import pallas as pl
from jax.experimental.pallas import tpu as pltpu

_LANES = 128          # lane width of the per-tile partial-sum output block
_OUT_SUBLANES = 8     # sublane height of the output block (f32 packing)


def _f1_loss_kernel(logits_ref, labels_ref, out_ref, *, eps, beta,
                    batch_size, tile_rows):
    i = pl.program_id(0)

    # Hot O(TB*C) math: sigmoid (EUP), elementwise mul (VPU), lane-axis
    # reductions (XLU). Promote to f32 in-register.
    p = jax.nn.sigmoid(logits_ref[...].astype(jnp.float32))        # (TB, C)
    l = labels_ref[...].astype(jnp.float32)                        # (TB, C)

    num_pos = jnp.sum(p, axis=1, keepdims=True) + eps               # (TB, 1)
    num_pos_hat = jnp.sum(l, axis=1, keepdims=True) + eps           # (TB, 1)
    tp = jnp.sum(l * p, axis=1, keepdims=True)                      # (TB, 1)

    precise = tp / num_pos
    recall = tp / num_pos_hat
    b2 = beta * beta
    # Exact divides kept (vs pl.reciprocal(approx=True)) so the result matches
    # the reference to ~1e-6; this per-row epilogue is O(TB), negligible next
    # to the HBM-bound O(TB*C) body.
    fs = (1.0 + b2) * precise * recall / (b2 * precise + recall + eps)  # (TB,1)

    # Mask rows of the (possibly padded) last tile: padded rows hold garbage
    # and must not contribute to the sum.
    row = jax.lax.broadcasted_iota(jnp.int32, fs.shape, 0) + i * tile_rows
    fs = jnp.where(row < batch_size, fs, 0.0)

    # Per-tile partial sum, broadcast into a lane-dense (8, 128) block.
    out_ref[...] = jnp.full(out_ref.shape, jnp.sum(fs), dtype=jnp.float32)


def _choose_tile_rows(B, C, logits_dtype, labels_dtype):
    it_max = max(jnp.dtype(logits_dtype).itemsize, jnp.dtype(labels_dtype).itemsize)
    it_min = min(jnp.dtype(logits_dtype).itemsize, jnp.dtype(labels_dtype).itemsize)
    # Sublane packing: 8 rows for 4-byte, 16 for 2-byte, 32 for 1-byte dtypes.
    sublane = 8 * max(1, 4 // max(1, it_min))
    # Cap each input tile at ~2 MiB: 2 inputs x 2 pipeline buffers <= 8 MiB,
    # comfortably inside v7x's 64 MiB physical and v5e's 16 MiB scoped VMEM.
    max_tile_bytes = 2 << 20
    tb = min(B, max_tile_bytes // max(1, C * it_max))
    tb = max(sublane, (tb // sublane) * sublane)
    return tb


def f1_loss(logits, labels, eps=1e-6, beta=2.0, tile_rows=None):
    assert logits.shape == labels.shape and logits.ndim == 2
    B, C = logits.shape
    if tile_rows is None:
        tile_rows = _choose_tile_rows(B, C, logits.dtype, labels.dtype)
    num_tiles = pl.cdiv(B, tile_rows)

    kernel = functools.partial(
        _f1_loss_kernel,
        eps=float(eps), beta=float(beta),
        batch_size=B, tile_rows=tile_rows,
    )

    partials = pl.pallas_call(
        kernel,
        out_shape=jax.ShapeDtypeStruct((_OUT_SUBLANES, _LANES * num_tiles),
                                       jnp.float32),
        grid=(num_tiles,),
        in_specs=[
            pl.BlockSpec((tile_rows, C), lambda i: (i, 0)),
            pl.BlockSpec((tile_rows, C), lambda i: (i, 0)),
        ],
        out_specs=pl.BlockSpec((_OUT_SUBLANES, _LANES), lambda i: (0, i)),
        compiler_params=pltpu.CompilerParams(
            dimension_semantics=("parallel",)),
    )(logits, labels)

    # Tiny final reduction in plain JAX: one scalar per tile, divided by B once.
    per_tile = partials[0].reshape(num_tiles, _LANES)[:, 0]
    return 1.0 - jnp.sum(per_tile) / B


def f1_loss_ref(logits, labels, eps=1e-6, beta=2.0):
    # Pure-JAX reference mirroring the PyTorch forward exactly.
    B = logits.shape[0]
    p = jax.nn.sigmoid(logits.astype(jnp.float32))
    l = labels.astype(jnp.float32)
    num_pos = jnp.sum(p, axis=1) + eps
    num_pos_hat = jnp.sum(l, axis=1) + eps
    tp = jnp.sum(l * p, axis=1)
    precise = tp / num_pos
    recall = tp / num_pos_hat
    b2 = beta * beta
    fs = (1 + b2) * precise * recall / (b2 * precise + recall + eps)
    return 1.0 - jnp.sum(fs) / B


if __name__ == "__main__":
    key = jax.random.PRNGKey(0)
    k1, k2, k3, k4 = jax.random.split(key, 4)

    # Primary small case, matching the module's (batch, classes) layout.
    B, C = 8, 128
    logits = jax.random.normal(k1, (B, C), dtype=jnp.float32)
    labels = (jax.random.uniform(k2, (B, C)) > 0.5).astype(jnp.float32)
    out = f1_loss(logits, labels)
    jax.block_until_ready(out)
    ref = f1_loss_ref(logits, labels)
    assert jnp.allclose(out, ref, atol=1e-5, rtol=1e-5), (out, ref)

    # Multi-tile + ragged-batch case: exercises grid pipelining, the parallel
    # grid axis, and the last-tile row mask (B % tile_rows != 0).
    B2, C2 = 20, 256
    logits2 = jax.random.normal(k3, (B2, C2), dtype=jnp.float32)
    labels2 = (jax.random.uniform(k4, (B2, C2)) > 0.5).astype(jnp.float32)
    out2 = f1_loss(logits2, labels2, tile_rows=8)
    jax.block_until_ready(out2)
    ref2 = f1_loss_ref(logits2, labels2)
    assert jnp.allclose(out2, ref2, atol=1e-5, rtol=1e-5), (out2, ref2)

    print("KERNEL_OK")
</pallas_src>

<mosaic_0001>
module attributes {stable_mosaic.version = 11 : i64} {
  func.func @_f1_loss_kernel(%arg0: i32, %arg1: memref<8x128xf32, #tpu.memory_space<vmem>>, %arg2: memref<8x128xf32, #tpu.memory_space<vmem>>, %arg3: memref<8x128xf32, #tpu.memory_space<vmem>>) attributes {dimension_semantics = [#tpu.dimension_semantics<parallel>], iteration_bounds = array<i64: 1>, scalar_prefetch = 0 : i64, scratch_operands = 0 : i64, tpu.core_type = #tpu.core_type<tc>, window_params = [{transform_indices = @transform_0, window_bounds = array<i64: 8, 128>}, {transform_indices = @transform_1, window_bounds = array<i64: 8, 128>}, {transform_indices = @transform_2, window_bounds = array<i64: 8, 128>}]} {
    %c0 = arith.constant 0 : index
    %c0_0 = arith.constant 0 : index
    %0 = vector.load %arg1[%c0, %c0_0] : memref<8x128xf32, #tpu.memory_space<vmem>>, vector<8x128xf32>
    %1 = arith.negf %0 : vector<8x128xf32>
    %2 = math.exp %1 : vector<8x128xf32>
    %cst = arith.constant 1.000000e+00 : f32
    %3 = vector.broadcast %cst : f32 to vector<8x128xf32>
    %4 = arith.addf %3, %2 : vector<8x128xf32>
    %5 = arith.divf %3, %4 : vector<8x128xf32>
    %c0_1 = arith.constant 0 : index
    %c0_2 = arith.constant 0 : index
    %6 = vector.load %arg2[%c0_1, %c0_2] : memref<8x128xf32, #tpu.memory_space<vmem>>, vector<8x128xf32>
    %cst_3 = arith.constant dense<0.000000e+00> : vector<8xf32>
    %7 = vector.multi_reduction <add>, %5, %cst_3 [1] : vector<8x128xf32> to vector<8xf32>
    %8 = vector.shape_cast %7 : vector<8xf32> to vector<8x1xf32>
    %cst_4 = arith.constant 9.99999997E-7 : f32
    %9 = vector.broadcast %cst_4 : f32 to vector<8x1xf32>
    %10 = arith.addf %8, %9 : vector<8x1xf32>
    %cst_5 = arith.constant dense<0.000000e+00> : vector<8xf32>
    %11 = vector.multi_reduction <add>, %6, %cst_5 [1] : vector<8x128xf32> to vector<8xf32>
    %12 = vector.shape_cast %11 : vector<8xf32> to vector<8x1xf32>
    %cst_6 = arith.constant 9.99999997E-7 : f32
    %13 = vector.broadcast %cst_6 : f32 to vector<8x1xf32>
    %14 = arith.addf %12, %13 : vector<8x1xf32>
    %15 = arith.mulf %6, %5 : vector<8x128xf32>
    %cst_7 = arith.constant dense<0.000000e+00> : vector<8xf32>
    %16 = vector.multi_reduction <add>, %15, %cst_7 [1] : vector<8x128xf32> to vector<8xf32>
    %17 = vector.shape_cast %16 : vector<8xf32> to vector<8x1xf32>
    %18 = arith.divf %17, %10 : vector<8x1xf32>
    %19 = arith.divf %17, %14 : vector<8x1xf32>
    %cst_8 = arith.constant 5.000000e+00 : f32
    %20 = vector.broadcast %cst_8 : f32 to vector<8x1xf32>
    %21 = arith.mulf %20, %18 : vector<8x1xf32>
    %22 = arith.mulf %21, %19 : vector<8x1xf32>
    %cst_9 = arith.constant 4.000000e+00 : f32
    %23 = vector.broadcast %cst_9 : f32 to vector<8x1xf32>
    %24 = arith.mulf %23, %18 : vector<8x1xf32>
    %25 = arith.addf %24, %19 : vector<8x1xf32>
    %cst_10 = arith.constant 9.99999997E-7 : f32
    %26 = vector.broadcast %cst_10 : f32 to vector<8x1xf32>
    %27 = arith.addf %25, %26 : vector<8x1xf32>
    %28 = arith.divf %22, %27 : vector<8x1xf32>
    %29 = tpu.iota {dimensions = array<i32: 0>} : vector<8x1xi32>
    %c8_i32 = arith.constant 8 : i32
    %30 = arith.muli %arg0, %c8_i32 : i32
    %31 = vector.broadcast %30 : i32 to vector<8x1xi32>
    %32 = arith.addi %29, %31 : vector<8x1xi32>
    %c8_i32_11 = arith.constant 8 : i32
    %33 = vector.broadcast %c8_i32_11 : i32 to vector<8x1xi32>
    %34 = arith.cmpi slt, %32, %33 : vector<8x1xi32>
    %cst_12 = arith.constant 0.000000e+00 : f32
    %35 = vector.broadcast %cst_12 : f32 to vector<8x1xf32>
    %36 = arith.select %34, %28, %35 : vector<8x1xi1>, vector<8x1xf32>
    %37 = vector.shape_cast %36 : vector<8x1xf32> to vector<1x8x1xf32>
    %cst_13 = arith.constant dense<0.000000e+00> : vector<1xf32>
    %38 = vector.multi_reduction <add>, %37, %cst_13 [1, 2] : vector<1x8x1xf32> to vector<1xf32>
    %39 = vector.shape_cast %38 : vector<1xf32> to vector<1x1x1xf32>
    %40 = vector.extract %39[0, 0, 0] : f32 from vector<1x1x1xf32>
    %41 = vector.broadcast %40 : f32 to vector<8x128xf32>
    %c0_14 = arith.constant 0 : index
    %c0_15 = arith.constant 0 : index
    %42 = vector.load %arg3[%c0_14, %c0_15] : memref<8x128xf32, #tpu.memory_space<vmem>>, vector<8x128xf32>
    tpu.vector_store %arg3[%c0_14, %c0_15], %41 {strides = array<i32>} : memref<8x128xf32, #tpu.memory_space<vmem>>, vector<8x128xf32>,
    return
  }
  func.func @transform_0(%arg0: i32) -> (i32, i32) {
    %c0_i32 = arith.constant 0 : i32
    %c0_i32_0 = arith.constant 0 : i32
    return %arg0, %c0_i32 : i32, i32
  }
  func.func @transform_1(%arg0: i32) -> (i32, i32) {
    %c0_i32 = arith.constant 0 : i32
    %c0_i32_0 = arith.constant 0 : i32
    return %arg0, %c0_i32 : i32, i32
  }
  func.func @transform_2(%arg0: i32) -> (i32, i32) {
    %c0_i32 = arith.constant 0 : i32
    %c0_i32_0 = arith.constant 0 : i32
    return %c0_i32, %arg0 : i32, i32
  }
}

</mosaic_0001>

<bundles_post_ra>
// kernel: tpu_custom_call.1
= control target key start
LH: loop header
LB: loop body
LE: loop exit
PB: predicated region body
PF: predicated region fallthrough
CT: control target
= control target key end

     0   :  { %7 = vsyncpa [#allocation3], 0  ;;  %s209_s0 = inlined_call_operand.hbm [shape: f32[8,128], index: 0, kind: input, shape index: {}]   ;;  %s210_s1 = inlined_call_operand.hbm [shape: f32[8,128], index: 1, kind: input, shape index: {}]   ;;  %s211_s2 = inlined_call_operand.hbm [shape: f32[8,128], index: 2, kind: output, shape index: {}]  }
   0x1   :  { %8 = vsyncpa [#allocation6], 0 }
   0x2   :  { %9 = vsyncpa [#allocation4], 0  ;;  %s182_s9 = smov [#allocation2]   ;;  %s183_s11 = smov [#allocation5]  }
   0x3   :  { %s16_s10 = sshll.u32 %s182_s9, 4  ;;  %s26_s12 = sshll.u32 %s183_s11, 4  ;;  %s17_s10 = int_to_ptr.vmem [resolvable:$true] %s16_s10  ;;  %s27_s12 = int_to_ptr.vmem [resolvable:$true] %s26_s12 }
   0x4   :  { %s124_s13 = scalar_lea.vmem %s17_s10, 128  ;;  %p129_p1 = scmp.lt.s32.totalorder %s17_s10, %s17_s10 }
   0x5   :  { %p125_p0 = scmp.ne.s32.totalorder %s17_s10, %s124_s13  ;;  %p130_p2 = scmp.lt.s32.totalorder %s124_s13, %s124_s13 }
   0x7   :  { %p131_p3 = por %p130_p2, %p129_p1 }
   0x9   :  { %p132_p4 = pnand %p131_p3, %p125_p0 }
   0xb   :  { %135 = shalt.err (!%p132_p4)
}
   0xc   :  { %19 = dma.hbm_to_vmem [thread:$0]  %s209_s0, 128, %s17_s10, [#allocation3]  }
   0xd   :  { %s144_s16 = scalar_lea.vmem %s27_s12, 128  ;;  %p149_p6 = scmp.lt.s32.totalorder %s27_s12, %s27_s12 }
   0xe   :  { %p145_p5 = scmp.ne.s32.totalorder %s27_s12, %s144_s16  ;;  %p150_p7 = scmp.lt.s32.totalorder %s144_s16, %s144_s16 }
  0x10   :  { %p151_p8 = por %p150_p7, %p149_p6 }
  0x12   :  { %p152_p9 = pnand %p151_p8, %p145_p5 }
  0x14   :  { %155 = shalt.err (!%p152_p9)
}
  0x15   :  { %29 = dma.hbm_to_vmem [thread:$0]  %s210_s1, 128, %s27_s12, [#allocation6]  }
  0x16   :  { %176 = dma.done.wait [#allocation3], 128  }
  0x17   :  { %177 = vsyncadd [#allocation3], 4294967168 }
  0x18   :  { %178 = dma.done.wait [#allocation6], 128  }
  0x19   :  { %179 = vsyncadd [#allocation6], 4294967168  ;;  %v36_v0 = vld [vmem:[#allocation2] sm:$0xff]  ;;  %v43_v5 = vld [vmem:[#allocation5] sm:$0xff]  ;;  %vm71_vm0 = vcmask 7168   ;;  %s184_s0 = smov [#allocation7]  }
  0x1a   :  { %v100_v1 = vmul.f32 -1.442695, %v36_v0  ;;  %s90_s1 = sshll.u32 %s184_s0, 4  ;;  %s91_s1 = int_to_ptr.vmem [resolvable:$true] %s90_s1 }
  0x1b   :  { %s156_s20 = scalar_lea.vmem %s91_s1, 128  ;;  %p161_p11 = scmp.lt.s32.totalorder %s91_s1, %s91_s1 }
  0x1c   :  { %106 = vpow2.f32 %v100_v1  ;;  %p157_p10 = scmp.ne.s32.totalorder %s91_s1, %s156_s20  ;;  %p162_p12 = scmp.lt.s32.totalorder %s156_s20, %s156_s20 }
  0x1e   :  { %p163_p13 = por %p162_p12, %p161_p11 }
  0x20   :  { %p164_p0 = pnand %p163_p13, %p157_p10 }
  0x29   :  { %v107_v2 = vpop.eup %106 }
  0x2a   :  { %v40_v3 = vadd.f32 1.0, %v107_v2 }
  0x2c   :  { %108 = vrcp.f32 %v40_v3 }
  0x39   :  { %v109_v4 = vpop.eup %108 }
  0x3a   :  { %44 = vadd.xlane.f32.xlu0 %v109_v4  ;;  %v50_v6 = vmul.f32 %v109_v4, %v43_v5 }
  0x3c   :  { %51 = vadd.xlane.f32.xlu1 %v50_v6 }
  0x3e   :  { %47 = vadd.xlane.f32.xlu0 %v43_v5 }
  0xc3   :  { %v45_v7 = vpop.xlane.xlu0 %44 }
  0xc4   :  { %v46_v8 = vadd.f32 1e-06, %v45_v7 }
  0xc5   :  { %v52_v11 = vpop.xlane.xlu1 %51 }
  0xc6   :  { %110 = vrcp.f32 %v46_v8 }
  0xc7   :  { %v48_v9 = vpop.xlane.xlu0 %47 }
  0xc8   :  { %v49_v10 = vadd.f32 1e-06, %v48_v9 }
  0xca   :  { %112 = vrcp.f32 %v49_v10 }
  0xd3   :  { %v111_v12 = vpop.eup %110 }
  0xd4   :  { %v54_v13 = vmul.f32 %v111_v12, %v52_v11 }
  0xd6   :  { %v59_v16 = vmul.f32 4.0, %v54_v13  ;;  %v57_v19 = vmul.f32 5.0, %v54_v13 }
  0xd7   :  { %v113_v14 = vpop.eup %112 }
  0xd8   :  { %v56_v15 = vmul.f32 %v113_v14, %v52_v11 }
  0xda   :  { %v60_v17 = vadd.f32 %v59_v16, %v56_v15  ;;  %v58_v20 = vmul.f32 %v57_v19, %v56_v15 }
  0xdc   :  { %v61_v18 = vadd.f32 1e-06, %v60_v17 }
  0xde   :  { %114 = vrcp.f32 %v61_v18 }
  0xeb   :  { %v115_v21 = vpop.eup %114 }
  0xec   :  { %v63_v22 = vmul.f32 %v115_v21, %v58_v20 }
  0xee   :  { %v72_v23 = vsel %vm71_vm0, %v63_v22, 0.0 }
  0xef   :  { %73 = vadd.xlane.f32.xlu1 %v72_v23 }
 0x178   :  { %v74_v24 = vpop.xlane.xlu1 %73 }
 0x179   :  { %v75_v25 = vrot.slane %v74_v24, 4 }
 0x17b   :  { %v76_v26 = vadd.f32 %v75_v25, %v74_v24 }
 0x17d   :  { %v77_v27 = vrot.slane %v76_v26, 2 }
 0x17f   :  { %v78_v28 = vadd.f32 %v77_v27, %v76_v26 }
 0x181   :  { %v79_v29 = vrot.slane %v78_v28, 1 }
 0x183   :  { %v80_v30 = vadd.f32 %v79_v29, %v78_v28 }
 0x185   :  { %101 = vpush %v80_v30 }
 0x1b6   :  { %s102_s19 = spop %101 }
 0x1b7   :  { %v82_v31 = vstv %s102_s19 }
 0x1b8   :  { %83 = vst [vmem:[#allocation7] sm:$0xff] %v82_v31 }
 0x1b9   :  { %167 = shalt.err (!%p164_p0)
}
 0x1ba   :  { %93 = dma.vmem_to_hbm [thread:$0]  %s91_s1, 128, %s211_s2, [#allocation4]  }
 0x1bb   :  { %180 = dma.done.wait [#allocation4], 128  }
 0x1bc   :  { %181 = vsyncadd [#allocation4], 4294967168 }
 0x1bd   :  { %97 = vsyncpa [#allocation3], 1 }
 0x1be   :  { %98 = vsyncpa [#allocation6], 1 }
 0x1bf   :  { %99 = vsyncpa [#allocation4], 1 }

</bundles_post_ra>
